<compile_context>
chip_gen: v6e
topology: v6e:2x2x1
jax: 0.10.0
libtpu: 0.0.40
codegen_flags: <defaults>
</compile_context>

<pallas_src>
import functools

import jax
import jax.numpy as jnp
from jax.experimental import pallas as pl
from jax.experimental.pallas import tpu as pltpu

NEG_SLOPE = 0.1


# ----------------------------------------------------------------------------- utils
def _round_up(x: int, m: int) -> int:
    return ((x + m - 1) // m) * m


def _cdiv(a: int, b: int) -> int:
    return (a + b - 1) // b


def _sublane_multiple(dtype) -> int:
    # rows per sublane group: f32 -> 8, bf16 -> 16, int8/fp8 -> 32
    return {4: 8, 2: 16, 1: 32}.get(jnp.dtype(dtype).itemsize, 8)


def _pick_tile(padded: int, cap: int) -> int:
    """Largest multiple-of-128 tile that exactly divides `padded`, capped at `cap`.

    Prefers the full padded dim (grid axis disappears / operand becomes resident)."""
    if padded <= cap:
        return padded
    best = 128
    t = 256
    while t <= cap:
        if padded % t == 0:
            best = t
        t += 128
    return best


_M_TILE_CANDS = (1024, 768, 512, 384, 256, 128)


def _pick_m_tile(M: int, sub: int) -> int:
    """Pick TM minimising padded MXU work (grid_m * TM); exact fit when M <= 1024."""
    if M <= 1024:
        exact = _round_up(M, sub)
        cands = (exact,) + tuple(c for c in _M_TILE_CANDS if c < exact)
    else:
        cands = _M_TILE_CANDS
    best_tm, best_work = None, None
    for c in cands:
        work = _cdiv(M, c) * c
        if best_work is None or work < best_work:
            best_tm, best_work = c, work
    return best_tm


# --------------------------------------------------------------------------- kernels
def _epilogue(y_f32, b_row, out_dtype):
    y = y_f32 + b_row.astype(jnp.float32)
    return jnp.where(y >= 0, y, NEG_SLOPE * y).astype(out_dtype)


def mlp_kernel_acc(x_ref, w_ref, b_ref, o_ref, acc_ref):
    """Variant with an f32 VMEM accumulator (used when the output dtype is not f32)."""
    k = pl.program_id(2)

    @pl.when(k == 0)
    def _():
        acc_ref[...] = jnp.zeros_like(acc_ref)

    acc_ref[...] += jnp.dot(
        x_ref[...], w_ref[...], preferred_element_type=jnp.float32
    )

    @pl.when(k == pl.num_programs(2) - 1)
    def _():
        o_ref[...] = _epilogue(acc_ref[...], b_ref[...], o_ref.dtype)


def mlp_kernel_f32out(x_ref, w_ref, b_ref, o_ref):
    """Variant that accumulates directly into the f32 output block (no scratch copy)."""
    k = pl.program_id(2)

    @pl.when(k == 0)
    def _():
        o_ref[...] = jnp.zeros_like(o_ref)

    o_ref[...] += jnp.dot(
        x_ref[...], w_ref[...], preferred_element_type=jnp.float32
    )

    @pl.when(k == pl.num_programs(2) - 1)
    def _():
        o_ref[...] = _epilogue(o_ref[...], b_ref[...], o_ref.dtype)


# --------------------------------------------------------------------------- wrapper
def prepare_weight(weight, compute_dtype=None):
    """One-time (init-time) weight prep.

    Takes the PyTorch-layout weight [d_hid, d_in], transposes to [d_in, d_hid] and
    zero-pads to lane-dense [K_pad, N_pad].  Doing this once removes the per-call
    HBM pad/copy and any in-kernel transpose.  Optionally casts (e.g. to bf16)."""
    d_hid, d_in = weight.shape
    K_pad = _round_up(d_in, 128)
    N_pad = _round_up(d_hid, 128)
    w_kn = weight.T
    if (K_pad, N_pad) != (d_in, d_hid):
        w_kn = jnp.pad(w_kn, ((0, K_pad - d_in), (0, N_pad - d_hid)))
    if compute_dtype is not None:
        w_kn = w_kn.astype(compute_dtype)
    return w_kn


@jax.jit
def mlp_forward(x, w_kn, bias):
    """Fused Linear + LeakyReLU(0.1) (+ identity dropout, p=0).

    x:    [..., d_in]     activations (f32 or bf16)
    w_kn: [K_pad, N_pad]  weight from prepare_weight()  (pre-transposed, pre-padded)
    bias: [d_hid]         unpadded bias
    returns [..., d_hid] in x.dtype
    """
    *lead, d_in = x.shape
    K_pad, N_pad = w_kn.shape
    d_hid = bias.shape[0]
    M = 1
    for s in lead:
        M *= s

    out_dtype = x.dtype
    sub = _sublane_multiple(out_dtype)

    # ---- activations: reshape; pad K only if required (zero pad -> exact result) ----
    x2d = x.reshape(M, d_in)
    if K_pad != d_in:
        x2d = jnp.pad(x2d, ((0, 0), (0, K_pad - d_in)))

    # bias is tiny: pad per call (negligible traffic), keep f32 for the epilogue.
    b2d = bias.reshape(1, d_hid).astype(jnp.float32)
    if N_pad != d_hid:
        b2d = jnp.pad(b2d, ((0, 0), (0, N_pad - d_hid)))

    # ---- tile plan ----
    TK = _pick_tile(K_pad, 1024)
    TN = _pick_tile(N_pad, 1024)
    TM = _pick_m_tile(M, sub)

    grid_m = _cdiv(M, TM)            # partial last M tile: masked store, no x padding
    grid_n = N_pad // TN
    grid_k = K_pad // TK

    # v7x has 2 TensorCores: give the second core work when there is only one (i, j) block.
    if grid_m * grid_n == 1 and TN % 256 == 0:
        TN //= 2
        grid_n = 2

    use_acc = out_dtype != jnp.float32

    x_by = jnp.dtype(x.dtype).itemsize
    w_by = jnp.dtype(w_kn.dtype).itemsize
    o_by = jnp.dtype(out_dtype).itemsize

    # double-buffered x/w/out tiles + f32 accumulator; worst case (all-1024, f32) ~28 MiB,
    # safe on v7x (64 MiB physical) and above the v5e/v6e scoped defaults once raised.
    footprint = 2 * (TM * TK * x_by + TK * TN * w_by + TM * TN * o_by) + TM * TN * 4
    vmem_limit = int(min(max(footprint + (8 << 20), 32 << 20), 56 << 20))

    flops = 2 * (grid_m * TM) * K_pad * N_pad
    bytes_accessed = (
        M * K_pad * x_by * grid_n          # x re-streamed once per N block column
        + K_pad * N_pad * w_by * grid_m    # w re-streamed once per M block row
        + M * N_pad * o_by                 # output written once
        + 4 * N_pad                        # bias
    )
    cost = pl.CostEstimate(
        flops=int(flops), transcendentals=0, bytes_accessed=int(bytes_accessed)
    )

    kernel = mlp_kernel_acc if use_acc else mlp_kernel_f32out
    scratch = [pltpu.VMEM((TM, TN), jnp.float32)] if use_acc else []

    out2d = pl.pallas_call(
        kernel,
        out_shape=jax.ShapeDtypeStruct((M, N_pad), out_dtype),
        grid_spec=pltpu.PrefetchScalarGridSpec(
            num_scalar_prefetch=0,
            grid=(grid_m, grid_n, grid_k),
            in_specs=[
                pl.BlockSpec((TM, TK), lambda i, j, k: (i, k)),   # activations
                pl.BlockSpec((TK, TN), lambda i, j, k: (k, j)),   # weight [K, N]
                pl.BlockSpec((1, TN), lambda i, j, k: (0, j)),    # bias
            ],
            out_specs=pl.BlockSpec((TM, TN), lambda i, j, k: (i, j)),
            scratch_shapes=scratch,
        ),
        compiler_params=pltpu.CompilerParams(
            dimension_semantics=("parallel", "parallel", "arbitrary"),
            vmem_limit_bytes=vmem_limit,
        ),
        cost_estimate=cost,
    )(x2d, w_kn, b2d)

    return out2d[:, :d_hid].reshape(*lead, d_hid)


# ------------------------------------------------------------------------ init / demo
def orthogonal_init(key, rows, cols, dtype=jnp.float32):
    """Deterministic analogue of torch.nn.init.orthogonal_ for a (rows, cols) matrix."""
    n, m = max(rows, cols), min(rows, cols)
    a = jax.random.normal(key, (n, m), dtype=jnp.float32)
    q, r = jnp.linalg.qr(a)
    q = q * jnp.sign(jnp.diagonal(r))[None, :]
    if rows < cols:
        q = q.T
    return q.astype(dtype)


if __name__ == "__main__":
    d_in, d_hid = 32, 64
    B, S = 2, 8

    key = jax.random.PRNGKey(0)
    k_x, k_w = jax.random.split(key)

    # parameters: orthogonal weight [d_hid, d_in] (PyTorch layout), zero bias [d_hid]
    weight = orthogonal_init(k_w, d_hid, d_in)
    bias = jnp.zeros((d_hid,), dtype=jnp.float32)

    # one-time init-step prep: transpose + pad the weight to [K_pad, N_pad]
    w_kn = prepare_weight(weight)

    # input [B, S, d_in]
    x = jax.random.normal(k_x, (B, S, d_in), dtype=jnp.float32)

    out = mlp_forward(x, w_kn, bias)
    out = jax.block_until_ready(out)

    # reference check in plain JAX
    ref = x @ weight.T + bias
    ref = jnp.where(ref >= 0, ref, NEG_SLOPE * ref)
    assert out.shape == (B, S, d_hid)
    assert jnp.allclose(out, ref, atol=1e-5, rtol=1e-5)

    print("KERNEL_OK")
</pallas_src>

<mosaic_0001>
module attributes {stable_mosaic.version = 11 : i64} {
  func.func @mlp_kernel_f32out(%arg0: i32, %arg1: i32, %arg2: i32, %arg3: memref<16x128xf32, #tpu.memory_space<vmem>>, %arg4: memref<128x128xf32, #tpu.memory_space<vmem>>, %arg5: memref<1x128xf32, #tpu.memory_space<vmem>>, %arg6: memref<16x128xf32, #tpu.memory_space<vmem>>) attributes {dimension_semantics = [#tpu.dimension_semantics<parallel>, #tpu.dimension_semantics<parallel>, #tpu.dimension_semantics<arbitrary>], iteration_bounds = array<i64: 1, 1, 1>, scalar_prefetch = 0 : i64, scratch_operands = 0 : i64, tpu.core_type = #tpu.core_type<tc>, window_params = [{transform_indices = @transform_0, window_bounds = array<i64: 16, 128>}, {transform_indices = @transform_1, window_bounds = array<i64: 128, 128>}, {transform_indices = @transform_2, window_bounds = array<i64: 1, 128>}, {transform_indices = @transform_3, window_bounds = array<i64: 16, 128>}]} {
    %c0_i32 = arith.constant 0 : i32
    %0 = arith.cmpi eq, %arg2, %c0_i32 : i32
    %1 = arith.extui %0 : i1 to i32
    %c0_i32_0 = arith.constant 0 : i32
    %2 = arith.cmpi ne, %1, %c0_i32_0 : i32
    scf.if %2 {
      %cst_10 = arith.constant 0.000000e+00 : f32
      %12 = vector.broadcast %cst_10 : f32 to vector<16x128xf32>
      %c0_11 = arith.constant 0 : index
      %c0_12 = arith.constant 0 : index
      %13 = vector.load %arg6[%c0_11, %c0_12] : memref<16x128xf32, #tpu.memory_space<vmem>>, vector<16x128xf32>
      tpu.vector_store %arg6[%c0_11, %c0_12], %12 {strides = array<i32>} : memref<16x128xf32, #tpu.memory_space<vmem>>, vector<16x128xf32>,
    } else {
    }
    %c0 = arith.constant 0 : index
    %c0_1 = arith.constant 0 : index
    %3 = vector.load %arg6[%c0, %c0_1] : memref<16x128xf32, #tpu.memory_space<vmem>>, vector<16x128xf32>
    %c0_2 = arith.constant 0 : index
    %c0_3 = arith.constant 0 : index
    %4 = vector.load %arg3[%c0_2, %c0_3] : memref<16x128xf32, #tpu.memory_space<vmem>>, vector<16x128xf32>
    %c0_4 = arith.constant 0 : index
    %c0_5 = arith.constant 0 : index
    %5 = vector.load %arg4[%c0_4, %c0_5] : memref<128x128xf32, #tpu.memory_space<vmem>>, vector<128x128xf32>
    %cst = arith.constant dense<0.000000e+00> : vector<16x128xf32>
    %6 = tpu.matmul %4, %5, %cst {dimension_numbers = #tpu.dot_dimension_numbers<[1], [0], [0], [1], [0, 0, 1, 1], [], []>} : vector<16x128xf32>, vector<128x128xf32>, vector<16x128xf32> -> vector<16x128xf32>
    %7 = arith.addf %3, %6 : vector<16x128xf32>
    %c0_6 = arith.constant 0 : index
    %c0_7 = arith.constant 0 : index
    %8 = vector.load %arg6[%c0_6, %c0_7] : memref<16x128xf32, #tpu.memory_space<vmem>>, vector<16x128xf32>
    tpu.vector_store %arg6[%c0_6, %c0_7], %7 {strides = array<i32>} : memref<16x128xf32, #tpu.memory_space<vmem>>, vector<16x128xf32>,
    %c0_i32_8 = arith.constant 0 : i32
    %9 = arith.cmpi eq, %arg2, %c0_i32_8 : i32
    %10 = arith.extui %9 : i1 to i32
    %c0_i32_9 = arith.constant 0 : i32
    %11 = arith.cmpi ne, %10, %c0_i32_9 : i32
    scf.if %11 {
      %c0_10 = arith.constant 0 : index
      %c0_11 = arith.constant 0 : index
      %12 = vector.load %arg6[%c0_10, %c0_11] : memref<16x128xf32, #tpu.memory_space<vmem>>, vector<16x128xf32>
      %c0_12 = arith.constant 0 : index
      %c0_13 = arith.constant 0 : index
      %13 = vector.load %arg5[%c0_12, %c0_13] : memref<1x128xf32, #tpu.memory_space<vmem>>, vector<1x128xf32>
      %14 = vector.broadcast %13 : vector<1x128xf32> to vector<16x128xf32>
      %15 = arith.addf %12, %14 : vector<16x128xf32>
      %cst_14 = arith.constant 0.000000e+00 : f32
      %16 = vector.broadcast %cst_14 : f32 to vector<16x128xf32>
      %17 = arith.cmpf oge, %15, %16 : vector<16x128xf32>
      %cst_15 = arith.constant 1.000000e-01 : f32
      %18 = vector.broadcast %cst_15 : f32 to vector<16x128xf32>
      %19 = arith.mulf %18, %15 : vector<16x128xf32>
      %20 = arith.select %17, %15, %19 : vector<16x128xi1>, vector<16x128xf32>
      %c0_16 = arith.constant 0 : index
      %c0_17 = arith.constant 0 : index
      %21 = vector.load %arg6[%c0_16, %c0_17] : memref<16x128xf32, #tpu.memory_space<vmem>>, vector<16x128xf32>
      tpu.vector_store %arg6[%c0_16, %c0_17], %20 {strides = array<i32>} : memref<16x128xf32, #tpu.memory_space<vmem>>, vector<16x128xf32>,
    } else {
    }
    return
  }
  func.func @transform_0(%arg0: i32, %arg1: i32, %arg2: i32) -> (i32, i32) {
    %c0_i32 = arith.constant 0 : i32
    return %arg0, %arg2 : i32, i32
  }
  func.func @transform_1(%arg0: i32, %arg1: i32, %arg2: i32) -> (i32, i32) {
    %c0_i32 = arith.constant 0 : i32
    return %arg2, %arg1 : i32, i32
  }
  func.func @transform_2(%arg0: i32, %arg1: i32, %arg2: i32) -> (i32, i32) {
    %c0_i32 = arith.constant 0 : i32
    %c0_i32_0 = arith.constant 0 : i32
    return %c0_i32, %arg1 : i32, i32
  }
  func.func @transform_3(%arg0: i32, %arg1: i32, %arg2: i32) -> (i32, i32) {
    %c0_i32 = arith.constant 0 : i32
    return %arg0, %arg1 : i32, i32
  }
}

</mosaic_0001>

<bundles_post_ra>
// kernel: mlp_forward.1
= control target key start
LH: loop header
LB: loop body
LE: loop exit
PB: predicated region body
PF: predicated region fallthrough
CT: control target
= control target key end

     0   :  { %8 = vsyncpa [#allocation3], 0  ;;  %s240_s12 = smov [#allocation2]   ;;  %s281_s0 = inlined_call_operand.vmem [shape: f32[16,128], index: 0, kind: input, shape index: {}]   ;;  %s282_s1 = inlined_call_operand.hbm [shape: f32[128,128], index: 1, kind: input, shape index: {}]   ;;  %s283_s2 = inlined_call_operand.vmem [shape: f32[1,128], index: 2, kind: input, shape index: {}]   ;;  %s284_s3 = inlined_call_operand.vmem [shape: f32[16,128], index: 3, kind: output, shape index: {}]  }
   0x1   :  { %s16_s13 = sshll.u32 %s240_s12, 4  ;;  %s17_s13 = int_to_ptr.vmem [resolvable:$true] %s16_s13 }
   0x2   :  { %s226_s14 = scalar_lea.vmem %s17_s13, 2048  ;;  %p231_p1 = scmp.lt.s32.totalorder %s17_s13, %s17_s13 }
   0x3   :  { %p227_p0 = scmp.ne.s32.totalorder %s17_s13, %s226_s14  ;;  %p232_p2 = scmp.lt.s32.totalorder %s226_s14, %s226_s14 }
   0x5   :  { %p233_p3 = por %p232_p2, %p231_p1 }
   0x7   :  { %p234_p4 = pnand %p233_p3, %p227_p0 }
   0x9   :  { %237 = shalt.err (!%p234_p4)
}
   0xa   :  { %s241_s15 = smov 128   ;;  %s242_s16 = smov 8  }
   0xb   :  { %22 = dma.hbm_to_vmem [thread:$0]  %s282_s1, 2048, %s17_s13, [#allocation3], %s241_s15, %s241_s15, %s242_s16  }
   0xc   :  { %238 = dma.done.wait [#allocation3], 2048  }
   0xd   :  { %239 = vsyncadd [#allocation3], 4294965248  ;;  %v53_v0 = vld [vmem:[#allocation2 + $0x78] sm:$0xff]  ;;  %v52_v1 = vld [vmem:[#allocation2 + $0x70] sm:$0xff] }
   0xe   :  { %179 = vmatprep.subr.mxu0 %v53_v0  ;;  %v51_v2 = vld [vmem:[#allocation2 + $0x68] sm:$0xff]  ;;  %v50_v3 = vld [vmem:[#allocation2 + $0x60] sm:$0xff]  ;;  %v49_v5 = vld [vmem:[#allocation2 + $0x58] sm:$0xff] }
   0xf   :  { %180 = vmatpush3.msra.mxu0 %v53_v0  ;;  %v36_v4 = vld [vmem:[%s281_s0] sm:$0xff]  ;;  %v48_v6 = vld [vmem:[#allocation2 + $0x50] sm:$0xff]  ;;  %v47_v7 = vld [vmem:[#allocation2 + $0x48] sm:$0xff] }
  0x10   :  { %181 = vmatprep.subr.mxu0 %v52_v1  ;;  %211 = vmatprep.mubr.f32.mxu0 %v36_v4  ;;  %v46_v8 = vld [vmem:[#allocation2 + $0x40] sm:$0xff]  ;;  %v45_v9 = vld [vmem:[#allocation2 + $0x38] sm:$0xff]  ;;  %v44_v10 = vld [vmem:[#allocation2 + $0x30] sm:$0xff] }
  0x11   :  { %182 = vmatpush3.msra.mxu0 %v52_v1  ;;  %v43_v11 = vld [vmem:[#allocation2 + $0x28] sm:$0xff]  ;;  %v42_v12 = vld [vmem:[#allocation2 + $0x20] sm:$0xff]  ;;  %v41_v13 = vld [vmem:[#allocation2 + $0x18] sm:$0xff] }
  0x12   :  { %183 = vmatprep.subr.mxu0 %v51_v2  ;;  %v40_v14 = vld [vmem:[#allocation2 + $0x10] sm:$0xff]  ;;  %v39_v15 = vld [vmem:[#allocation2 + $0x8] sm:$0xff]  ;;  %v38_v16 = vld [vmem:[#allocation2] sm:$0xff] }
  0x13   :  { %184 = vmatpush3.msra.mxu0 %v51_v2  ;;  %v37_v17 = vld [vmem:[%s281_s0 + $0x8] sm:$0xff]  ;;  %v160_v19 = vld [vmem:[%s283_s2] ss:$0 sm:$0xff] }
  0x14   :  { %185 = vmatprep.subr.mxu0 %v50_v3 }
  0x15   :  { %186 = vmatpush3.msra.mxu0 %v50_v3 }
  0x16   :  { %187 = vmatprep.subr.mxu0 %v49_v5 }
  0x17   :  { %188 = vmatpush3.msra.mxu0 %v49_v5 }
  0x18   :  { %189 = vmatprep.subr.mxu0 %v48_v6 }
  0x19   :  { %190 = vmatpush3.msra.mxu0 %v48_v6 }
  0x1a   :  { %191 = vmatprep.subr.mxu0 %v47_v7 }
  0x1b   :  { %192 = vmatpush3.msra.mxu0 %v47_v7 }
  0x1c   :  { %193 = vmatprep.subr.mxu0 %v46_v8 }
  0x1d   :  { %194 = vmatpush3.msra.mxu0 %v46_v8 }
  0x1e   :  { %195 = vmatprep.subr.mxu0 %v45_v9 }
  0x1f   :  { %196 = vmatpush3.msra.mxu0 %v45_v9 }
  0x20   :  { %197 = vmatprep.subr.mxu0 %v44_v10 }
  0x21   :  { %198 = vmatpush3.msra.mxu0 %v44_v10 }
  0x22   :  { %199 = vmatprep.subr.mxu0 %v43_v11 }
  0x23   :  { %200 = vmatpush3.msra.mxu0 %v43_v11 }
  0x24   :  { %201 = vmatprep.subr.mxu0 %v42_v12 }
  0x25   :  { %202 = vmatpush3.msra.mxu0 %v42_v12 }
  0x26   :  { %203 = vmatprep.subr.mxu0 %v41_v13 }
  0x27   :  { %204 = vmatpush3.msra.mxu0 %v41_v13 }
  0x28   :  { %205 = vmatprep.subr.mxu0 %v40_v14 }
  0x29   :  { %206 = vmatpush3.msra.mxu0 %v40_v14 }
  0x2a   :  { %207 = vmatprep.subr.mxu0 %v39_v15 }
  0x2b   :  { %208 = vmatpush3.msra.mxu0 %v39_v15 }
  0x2c   :  { %209 = vmatprep.subr.mxu0 %v38_v16 }
  0x2d   :  { %210 = vmatpush3.msra.mxu0 %v38_v16 }
  0x2e   :  { %212 = vmatmul.mubr.f32.vlgmr.msra.gmra.mxu0 %v37_v17 }
  0xee   :  { %v213_v18 = vpop.f32.mrf.mxu0 }
  0xef   :  { %v146_v21 = vadd.f32 %v213_v18, %v160_v19 }
  0xf0   :  { %v120_v20 = vpop.f32.mrf.mxu0 }
  0xf1   :  { %vm148_vm0 = vcmp.ge.f32.partialorder %v146_v21, 0.0  ;;  %v150_v22 = vmul.f32 0.1, %v146_v21  ;;  %v145_v23 = vadd.f32 %v160_v19, %v120_v20 }
  0xf3   :  { %v152_v24 = vsel %vm148_vm0, %v146_v21, %v150_v22  ;;  %vm147_vm1 = vcmp.ge.f32.partialorder %v145_v23, 0.0  ;;  %v149_v25 = vmul.f32 0.1, %v145_v23 }
  0xf4   :  { %154 = vst [vmem:[%s284_s3 + $0x8] sm:$0xff] %v152_v24 }
  0xf5   :  { %v151_v26 = vsel %vm147_vm1, %v145_v23, %v149_v25 }
  0xf6   :  { %153 = vst [vmem:[%s284_s3] sm:$0xff] %v151_v26 }
  0xf7   :  { %159 = vsyncpa [#allocation3], 1 }

</bundles_post_ra>
